<compile_context>
chip_gen: v6e
topology: v6e:2x2x1
jax: 0.10.0
libtpu: 0.0.40
codegen_flags: <defaults>
</compile_context>

<pallas_src>
import jax
import jax.numpy as jnp
from jax.experimental import pallas as pl
from jax.experimental.pallas import tpu as pltpu


def _spatial_attention_kernel(w_ref, x_ref, o_ref):
    # w_ref: SMEM (2,) f32   -- [w_avg / C, w_max]  (mean's 1/C pre-folded)
    # x_ref: VMEM (C, T_hw)  -- one batch element, one lane-dense spatial tile
    # o_ref: VMEM (C, T_hw)
    x = x_ref[...].astype(jnp.float32)                  # (C, T)

    # Channel reduction (sublane / cross-vreg axis -> cheap; lanes stay dense).
    sum_c = jnp.sum(x, axis=0, keepdims=True)           # (1, T)
    max_c = jnp.max(x, axis=0, keepdims=True)           # (1, T)

    # 1x1 conv over the 2 stacked "channels" (no bias) -> weighted sum.
    att = w_ref[0] * sum_c + w_ref[1] * max_c            # (1, T)

    # Sigmoid gate (EUP), broadcast multiply against the original input (VPU).
    gate = jax.nn.sigmoid(att)                           # (1, T)
    o_ref[...] = (x * gate).astype(o_ref.dtype)


def spatial_attention(x, conv_weight, *, target_lanes=1024,
                      vmem_data_budget_bytes=12 * 1024 * 1024):
    """x: (B, C, H, W); conv_weight: (1, 2, 1, 1) from Conv2d(2, 1, 1, bias=False)."""
    B, C, H, W = x.shape
    HW = H * W
    itemsize = jnp.dtype(x.dtype).itemsize

    # Fold the mean's 1/C into the first conv weight: att = (w0/C)*sum + w1*max.
    w = conv_weight.reshape(2).astype(jnp.float32)
    w_folded = jnp.stack([w[0] / jnp.float32(C), w[1]])

    # Lane-dense spatial tile: multiple of 128, capped by a VMEM data budget.
    # Per step: x block + out block, each double-buffered => 4 * C * T_hw * itemsize.
    bytes_per_lane = 4 * C * itemsize
    cap = max(128, (vmem_data_budget_bytes // bytes_per_lane) // 128 * 128)
    t_hw = int(min(target_lanes, cap, pl.cdiv(HW, 128) * 128))
    hw_pad = pl.cdiv(HW, t_hw) * t_hw

    # Flatten spatial dims onto the lane axis; zero-pad to a tile multiple.
    # (Padded positions compute harmless values and are sliced off below.)
    x3 = x.reshape(B, C, HW)
    if hw_pad != HW:
        x3 = jnp.pad(x3, ((0, 0), (0, 0), (0, hw_pad - HW)))

    grid = (B, hw_pad // t_hw)

    cost = pl.CostEstimate(
        flops=3 * B * C * HW,            # sum + max + gate multiply (approx.)
        transcendentals=B * HW,          # one sigmoid per spatial position
        bytes_accessed=2 * B * C * HW * itemsize,
    )

    out = pl.pallas_call(
        _spatial_attention_kernel,
        out_shape=jax.ShapeDtypeStruct((B, C, hw_pad), x.dtype),
        grid=grid,
        in_specs=[
            pl.BlockSpec(memory_space=pltpu.SMEM),                       # folded weights
            pl.BlockSpec((pl.Squeezed(), C, t_hw), lambda b, s: (b, 0, s)),
        ],
        out_specs=pl.BlockSpec((pl.Squeezed(), C, t_hw), lambda b, s: (b, 0, s)),
        compiler_params=pltpu.CompilerParams(
            dimension_semantics=("parallel", "parallel"),
            vmem_limit_bytes=32 * 1024 * 1024,
        ),
        cost_estimate=cost,
    )(w_folded, x3)

    if hw_pad != HW:
        out = out[:, :, :HW]
    return out.reshape(B, C, H, W)


def spatial_attention_ref(x, conv_weight):
    """Plain-JAX reference mirroring the PyTorch forward."""
    avg_out = jnp.mean(x, axis=1, keepdims=True)
    max_out = jnp.max(x, axis=1, keepdims=True)
    w = conv_weight.reshape(2)
    att = w[0] * avg_out + w[1] * max_out
    return x * jax.nn.sigmoid(att)


if __name__ == "__main__":
    key = jax.random.PRNGKey(0)
    kx, kw = jax.random.split(key)

    # Small shapes consistent with the module (NCHW).
    B, C, H, W = 2, 4, 16, 16
    x = jax.random.normal(kx, (B, C, H, W), dtype=jnp.float32)

    # Conv2d(2, 1, kernel_size=1, bias=False) -> weight shape (1, 2, 1, 1).
    conv_weight = jax.random.normal(kw, (1, 2, 1, 1), dtype=jnp.float32) * 0.5

    out = spatial_attention(x, conv_weight)
    out = jax.block_until_ready(out)

    ref = spatial_attention_ref(x, conv_weight)
    assert out.shape == (B, C, H, W)
    assert jnp.allclose(out, ref, atol=1e-5, rtol=1e-5)

    print("KERNEL_OK")
</pallas_src>

<mosaic_0001>
module attributes {stable_mosaic.version = 11 : i64} {
  func.func @_spatial_attention_kernel(%arg0: i32, %arg1: i32, %arg2: memref<2xf32, #tpu.memory_space<smem>>, %arg3: memref<1x4x256xf32, #tpu.memory_space<vmem>>, %arg4: memref<1x4x256xf32, #tpu.memory_space<vmem>>) attributes {dimension_semantics = [#tpu.dimension_semantics<parallel>, #tpu.dimension_semantics<parallel>], iteration_bounds = array<i64: 2, 1>, scalar_prefetch = 0 : i64, scratch_operands = 0 : i64, tpu.core_type = #tpu.core_type<tc>, window_params = [{transform_indices = @transform_0, window_bounds = array<i64: 2>}, {transform_indices = @transform_1, window_bounds = array<i64: 1, 4, 256>}, {transform_indices = @transform_2, window_bounds = array<i64: 1, 4, 256>}]} {
    %c0 = arith.constant 0 : index
    %c0_0 = arith.constant 0 : index
    %c0_1 = arith.constant 0 : index
    %0 = vector.load %arg3[%c0, %c0_0, %c0_1] : memref<1x4x256xf32, #tpu.memory_space<vmem>>, vector<1x4x256xf32>
    %1 = vector.shape_cast %0 : vector<1x4x256xf32> to vector<4x256xf32>
    %cst = arith.constant dense<0.000000e+00> : vector<256xf32>
    %2 = vector.multi_reduction <add>, %1, %cst [0] : vector<4x256xf32> to vector<256xf32>
    %3 = vector.shape_cast %2 : vector<256xf32> to vector<1x256xf32>
    %cst_2 = arith.constant dense<0xFF800000> : vector<256xf32>
    %4 = vector.multi_reduction <maximumf>, %1, %cst_2 [0] : vector<4x256xf32> to vector<256xf32>
    %5 = vector.shape_cast %4 : vector<256xf32> to vector<1x256xf32>
    %c0_3 = arith.constant 0 : index
    %6 = memref.load %arg2[%c0_3] : memref<2xf32, #tpu.memory_space<smem>>
    %7 = vector.broadcast %6 : f32 to vector<1x256xf32>
    %8 = arith.mulf %7, %3 : vector<1x256xf32>
    %c1 = arith.constant 1 : index
    %9 = memref.load %arg2[%c1] : memref<2xf32, #tpu.memory_space<smem>>
    %10 = vector.broadcast %9 : f32 to vector<1x256xf32>
    %11 = arith.mulf %10, %5 : vector<1x256xf32>
    %12 = arith.addf %8, %11 : vector<1x256xf32>
    %13 = arith.negf %12 : vector<1x256xf32>
    %14 = math.exp %13 : vector<1x256xf32>
    %cst_4 = arith.constant 1.000000e+00 : f32
    %15 = vector.broadcast %cst_4 : f32 to vector<1x256xf32>
    %16 = arith.addf %15, %14 : vector<1x256xf32>
    %17 = arith.divf %15, %16 : vector<1x256xf32>
    %18 = vector.broadcast %17 : vector<1x256xf32> to vector<4x256xf32>
    %19 = arith.mulf %1, %18 : vector<4x256xf32>
    %c0_5 = arith.constant 0 : index
    %c0_6 = arith.constant 0 : index
    %c0_7 = arith.constant 0 : index
    %20 = vector.load %arg4[%c0_5, %c0_6, %c0_7] : memref<1x4x256xf32, #tpu.memory_space<vmem>>, vector<1x4x256xf32>
    %21 = vector.shape_cast %20 : vector<1x4x256xf32> to vector<4x256xf32>
    %22 = vector.shape_cast %19 : vector<4x256xf32> to vector<1x4x256xf32>
    tpu.vector_store %arg4[%c0_5, %c0_6, %c0_7], %22 {strides = array<i32>} : memref<1x4x256xf32, #tpu.memory_space<vmem>>, vector<1x4x256xf32>,
    return
  }
  func.func @transform_0(%arg0: i32, %arg1: i32) -> i32 {
    %c0_i32 = arith.constant 0 : i32
    %c0_i32_0 = arith.constant 0 : i32
    return %c0_i32 : i32
  }
  func.func @transform_1(%arg0: i32, %arg1: i32) -> (i32, i32, i32) {
    %c0_i32 = arith.constant 0 : i32
    %c0_i32_0 = arith.constant 0 : i32
    return %arg0, %c0_i32, %arg1 : i32, i32, i32
  }
  func.func @transform_2(%arg0: i32, %arg1: i32) -> (i32, i32, i32) {
    %c0_i32 = arith.constant 0 : i32
    %c0_i32_0 = arith.constant 0 : i32
    return %arg0, %c0_i32, %arg1 : i32, i32, i32
  }
}

</mosaic_0001>

<bundles_post_ra>
// kernel: tpu_custom_call.1
= control target key start
LH: loop header
LB: loop body
LE: loop exit
PB: predicated region body
PF: predicated region fallthrough
CT: control target
= control target key end

     0   :  { %7 = vsyncpa [#allocation5], 0  ;;  %s782_s0 = inlined_call_operand.hbm [shape: f32[2], index: 0, kind: input, shape index: {}]   ;;  %s783_s1 = inlined_call_operand.hbm [shape: f32[2,4,256], index: 1, kind: input, shape index: {}]   ;;  %s784_s2 = inlined_call_operand.hbm [shape: f32[2,4,256], index: 2, kind: output, shape index: {}]  }
   0x1   :  { %8 = vsyncpa [#allocation3], 0 }
   0x2   :  { %10 = vsyncpa [#allocation3 + $0x1], 0 }
   0x3   :  { %11 = vsyncpa [#allocation4], 0 }
   0x4   :  { %13 = vsyncpa [#allocation4 + $0x1], 0  ;;  %s613_s9 = smov 0   ;;  %s615_s10 = smov 0  }
   0x5   :  { %s617_s11 = smov 0   ;;  %s619_s12 = smov 0  }
   0x6   :  { %s621_s13 = smov 0   ;;  %s623_s14 = smov 0  }
   0x7 LB: > { %s366_s15 = sadd.s32 4294967295, %s593_s14   ;;  %s367_s16 = sadd.s32 4294967294, %s593_s14   ;;  %s593_s14 = sphi %s623_s14, %s19_s14   ;;  %s589_s13 = sphi %s621_s13, %s801_s13   ;;  %s585_s12 = sphi %s619_s12, %s800_s12   ;;  %s581_s11 = sphi %s617_s11, %s799_s11   ;;  %s577_s10 = sphi %s615_s10, %s798_s10   ;;  %s573_s9 = sphi %s613_s9, %s797_s9  }
   0x8   : > { %p74_p0 = scmp.ne.s32.totalorder %s577_s10, %s573_s9  ;;  %p647_p1 = scmp.eq.s32.totalorder %s366_s15, 0 }
   0x9   : > { %p651_p2 = scmp.eq.s32.totalorder %s366_s15, 1  ;;  %p106_p3 = scmp.eq.s32.totalorder %s367_s16, 1 }
   0xa   : > { %p657_p4 = por %p647_p1, %p74_p0  ;;  %p368_p5 = scmp.ge.s32.totalorder %s593_s14, 1 }
   0xb   : > { %p662_p6 = por %p106_p3, %p74_p0  ;;  %p113_p7 = scmp.lt.s32.totalorder %s593_s14, 3 }
   0xc   : > { %s31_s22 = sadd.s32 1, %s589_s13  ;;  %s61_s23 = sadd.s32 1, %s581_s11 }
   0xd   : > { %s789_s20 = scalar_select %p662_p6, 1, 0 }
   0xe   : > { %p667_p8 = pnand %p368_p5, %p113_p7  ;;  %p33_p12 = scmp.ge.s32.totalorder %s31_s22, 2 }
   0xf   : > { %p68_p13 = scmp.ne.s32.totalorder %s581_s11, %s577_s10  ;;  %p69_p0 = scmp.eq.s32.totalorder %s593_s14, 0 }
  0x10   : > { %p396_p10 = pneg %p667_p8  ;;  %s595_s24 = smov [#allocation2]  }
  0x11   : > { %s803_s22 = smov (%p33_p12, %s31_s22), 0  ;;  %p686_p3 = por %p69_p0, %p68_p13 }
  0x12   : > { %p397_p11 = pnand %p396_p10, %p647_p1  ;;  %p692_p5 = por %p651_p2, %p68_p13 }
  0x13   : > { %s56_s29 = ssub.s32 %s589_s13, %s803_s22  ;;  %p409_p7 = scmp.lt.s32.totalorder %s593_s14, 2 }
  0x14   : > { %399 = dma.hbm_to_smem (!%p397_p11), %s782_s0, 16, %s595_s24, [#allocation5]  }
  0x15   : > { %s792_s28 = scalar_select %p692_p5, 1, 0 }
  0x16   : > { %p59_p10 = scmp.eq.s32.totalorder %s56_s29, 0  ;;  %s135_s30 = sand.u32 1, %s581_s11  }
  0x17   : > { %s371_s3 = sshll.u32 %s135_s30, 3  ;;  %s386_s5 = sshll.u32 %s589_s13, 7 }
  0x18   : > { %s701_s4 = scalar_select %p59_p10, %s581_s11, %s61_s23  }
  0x19   : > { %s147_s8 = scalar_lea.hbm %s783_s1, %s386_s5  ;;  %s139_s15 = scalar_lea.vmem [#allocation6], %s371_s3 }
  0x1a   : > { %s149_s16 = sshll.u32 %s139_s15, 4  ;;  %p709_p2 = pnand %p409_p7, %p686_p3  ;;  %s150_s16 = int_to_ptr.vmem [resolvable:$true] %s149_s16 }
  0x1b   : > { %s136_s24 = scalar_lea.sflag [#allocation3], %s135_s30  ;;  %s494_s25 = scalar_lea.vmem %s150_s16, 128 }
  0x1c   : > { %p483_p11 = pneg %p709_p2  ;;  %p495_p12 = scmp.ne.s32.totalorder %s150_s16, %s494_s25 }
  0x1d   : > { %s596_s23 = smov [#allocation6]  }
  0x1e   : > { %p497_p13 = pnand %p495_p12, %p483_p11  ;;  %s499_s26 = sshll.u32 %s596_s23, 4  ;;  %s500_s26 = int_to_ptr.vmem [resolvable:$false] %s499_s26 }
  0x1f   : > { %s501_s29 = scalar_lea.vmem %s500_s26, 256  ;;  %p502_p10 = scmp.lt.s32.totalorder %s150_s16, %s500_s26 }
  0x20   : > { %p498_p0 = pneg %p497_p13  ;;  %p503_p9 = scmp.lt.s32.totalorder %s501_s29, %s494_s25 }
  0x22   : > { %p504_p6 = por %p503_p9, %p502_p10 }
  0x24   : > { %p505_p5 = pnand %p504_p6, %p498_p0 }
  0x26   : > { %508 = shalt.err (!%p505_p5)
}
  0x27   : > { %403 = dma.hbm_to_vmem [thread:$0]  (!%p709_p2), %s147_s8, 128, %s150_s16, %s136_s24  }
  0x28   : > { %158 = sbr.rel (%p667_p8) target bundleno = 121 (0x79), region = 28 }
  0x2d   : > { %560 = dma.done.wait (%p647_p1), [#allocation5], 16  }
  0x2e   : > { %562 = vsyncadd (%p647_p1), [#allocation5], 4294967280  ;;  %s724_s27 = sand.u32 1, %s577_s10  }
  0x2f   : > { %s376_s30 = sshll.u32 %s724_s27, 3  ;;  %s165_s3 = scalar_lea.sflag [#allocation3], %s724_s27 }
  0x30   : > { %s168_s5 = scalar_lea.vmem [#allocation6], %s376_s30 }
  0x31   : > { %564 = dma.done.wait (%p657_p4), %s165_s3, 128  }
  0x32   : > { %566 = vsyncadd (%p657_p4), %s165_s3, 4294967168 }
  0x33   : > { %173 = sfence }
  0x34   : > { %v192_v0 = vld [vmem:[%s168_s5] sm:$0xff]  ;;  %vm196_vm0 = vcmask 1043456   ;;  %s225_s17 = sld [smem:[#allocation2]]  ;;  %s189_s19 = scalar_lea.vmem [#allocation7], %s376_s30 }
  0x35   : > { %v194_v1 = vcombine.high %v192_v0, %v192_v0  ;;  %v197_v2 = vsel %vm196_vm0, %v192_v0, 0.0  ;;  %v211_v3 = vsel %vm196_vm0, %v192_v0, -inf  ;;  %s378_s21 = sld [smem:[#allocation2 + $0x1]]  ;;  %s270_s6 = sshll.u32 %s189_s19, 4  ;;  %s737_s6 = int_to_ptr.vmem [resolvable:$true] %s270_s6 }
  0x36   : > { %v198_v4 = vrot.slane %v197_v2, 4  ;;  %v212_v5 = vrot.slane %v211_v3, 4  ;;  %s387_s7 = sshll.u32 %s585_s12, 7  ;;  %s254_s18 = scalar_lea.sflag [#allocation4], %s724_s27 }
  0x37   : > { %v204_v6 = vsel %vm196_vm0, %v194_v1, 0.0  ;;  %v218_v7 = vsel %vm196_vm0, %v194_v1, -inf  ;;  %s268_s16 = scalar_lea.hbm %s784_s2, %s387_s7  ;;  %s509_s24 = scalar_lea.vmem %s737_s6, 128 }
  0x38   : > { %v199_v8 = vadd.f32 %v198_v4, %v197_v2  ;;  %v205_v9 = vrot.slane %v204_v6, 4  ;;  %v213_v10 = vmax.f32 %v211_v3, %v212_v5  ;;  %v219_v11 = vrot.slane %v218_v7, 4  ;;  %p510_p1 = scmp.ne.s32.totalorder %s737_s6, %s509_s24  ;;  %p794_p4 = scmp.ne.s32.totalorder %s792_s28, 0 }
  0x39   : > { %s597_s25 = smov [#allocation7]  }
  0x3a   : > { %v200_v12 = vrot.slane %v199_v8, 2  ;;  %v206_v13 = vadd.f32 %v205_v9, %v204_v6  ;;  %v214_v14 = vrot.slane %v213_v10, 2  ;;  %v220_v15 = vmax.f32 %v218_v7, %v219_v11  ;;  %p511_p6 = pnand %p510_p1, %p794_p4  ;;  %s513_s12 = sshll.u32 %s597_s25, 4  ;;  %s514_s12 = int_to_ptr.vmem [resolvable:$false] %s513_s12 }
  0x3b   : > { %v226_v24 = vstv %s225_s17  ;;  %v230_v25 = vstv %s378_s21  ;;  %s515_s23 = scalar_lea.vmem %s514_s12, 256  ;;  %p516_p9 = scmp.lt.s32.totalorder %s737_s6, %s514_s12 }
  0x3c   : > { %v201_v16 = vadd.f32 %v200_v12, %v199_v8  ;;  %v207_v17 = vrot.slane %v206_v13, 2  ;;  %v215_v18 = vmax.f32 %v213_v10, %v214_v14  ;;  %v221_v19 = vrot.slane %v220_v15, 2  ;;  %p512_p8 = pneg %p511_p6  ;;  %p517_p3 = scmp.lt.s32.totalorder %s515_s23, %s509_s24 }
  0x3e   : > { %v202_v20 = vrot.slane %v201_v16, 1  ;;  %v208_v21 = vadd.f32 %v207_v17, %v206_v13  ;;  %v216_v22 = vrot.slane %v215_v18, 1  ;;  %v222_v23 = vmax.f32 %v220_v15, %v221_v19  ;;  %p518_p5 = por %p517_p3, %p516_p9 }
  0x40   : > { %v203_v26 = vadd.f32 %v202_v20, %v201_v16  ;;  %v209_v27 = vrot.slane %v208_v21, 1  ;;  %v217_v28 = vmax.f32 %v215_v18, %v216_v22  ;;  %v223_v29 = vrot.slane %v222_v23, 1  ;;  %p519_p7 = pnand %p518_p5, %p512_p8 }
  0x42   : > { %v210_v30 = vadd.f32 %v209_v27, %v208_v21  ;;  %v224_v31 = vmax.f32 %v222_v23, %v223_v29  ;;  %v227_v32 = vmul.f32 %v226_v24, %v203_v26  ;;  %v231_v33 = vmul.f32 %v230_v25, %v217_v28 }
  0x44   : > { %v228_v34 = vmul.f32 %v226_v24, %v210_v30  ;;  %v232_v35 = vmul.f32 %v230_v25, %v224_v31  ;;  %v233_v36 = vadd.f32 %v231_v33, %v227_v32 }
  0x46   : > { %v234_v37 = vadd.f32 %v232_v35, %v228_v34  ;;  %v379_v38 = vmul.f32 -1.442695, %v233_v36 }
  0x48   : > { %462 = vpow2.f32 %v379_v38  ;;  %v380_v39 = vmul.f32 -1.442695, %v234_v37 }
  0x4a   : > { %464 = vpow2.f32 %v380_v39 }
  0x55   : > { %v463_v40 = vpop.eup %462 }
  0x56   : > { %v241_v41 = vadd.f32 1.0, %v463_v40 }
  0x57   : > { %v465_v42 = vpop.eup %464 }
  0x58   : > { %v242_v43 = vadd.f32 1.0, %v465_v42  ;;  %466 = vrcp.f32 %v241_v41 }
  0x5a   : > { %468 = vrcp.f32 %v242_v43 }
  0x65   : > { %v467_v44 = vpop.eup %466 }
  0x67   : > { %v469_v45 = vpop.eup %468 }
  0x68   : > { %v249_v46 = vcombine.low %v467_v44, %v469_v45 }
  0x6a   : > { %v251_v47 = vmul.f32 %v249_v46, %v192_v0 }
  0x6c   : > { %252 = vst [vmem:[%s189_s19] sm:$0xff] %v251_v47 }
  0x6d   : > { %522 = shalt.err (!%p519_p7)
}
  0x6e   : > { %s523_s26 = scalar_lea.hbm %s268_s16, 128  ;;  %s527_s30 = scalar_lea.hbm %s784_s2, 256 }
  0x6f   : > { %p524_p2 = scmp.ne.s32.totalorder %s268_s16, %s523_s26  ;;  %p528_p13 = scmp.lt.s32.totalorder %s268_s16, %s784_s2 }
  0x70   : > { %p529_p0 = scmp.lt.s32.totalorder %s527_s30, %s523_s26 }
  0x71   : > { %p525_p11 = pnand %p524_p2, %p794_p4 }
  0x72   : > { %p530_p10 = por %p529_p0, %p528_p13 }
  0x73   : > { %p526_p12 = pneg %p525_p11 }
  0x75   : > { %p531_p1 = pnand %p530_p10, %p526_p12 }
  0x77   : > { %534 = shalt.err (!%p531_p1)
}
  0x78   : > { %394 = dma.vmem_to_hbm [thread:$0]  (%p794_p4), %s737_s6, 128, %s268_s16, %s254_s18  }
  0x79 PF: > { %s282_s17 = sand.u32 1, %s573_s9   ;;  %p795_p6 = scmp.ne.s32.totalorder %s789_s20, 0 }
  0x7a   : > { %p796_p8 = scmp.ge.s32.totalorder %s593_s14, 2  ;;  %s283_s21 = scalar_lea.sflag [#allocation4], %s282_s17 }
  0x7c   : > { %p405_p9 = pnand %p796_p8, %p795_p6 }
  0x7e   : > { %p406_p3 = pneg %p405_p9 }
  0x80   : > { %568 = dma.done.wait (%p406_p3), %s283_s21, 128  }
  0x81   : > { %570 = vsyncadd (%p406_p3), %s283_s21, 4294967168  ;;  %s19_s14 = sadd.s32 1, %s593_s14   ;;  %s797_s9 = smov %s577_s10 }
  0x82   : > { %p16_p5 = scmp.ge.s32.totalorder %s19_s14, 4   ;;  %s798_s10 = smov %s581_s11 }
  0x83   : > { %s799_s11 = smov %s701_s4  ;;  %s800_s12 = smov %s589_s13 }
  0x84   : > { %s801_s13 = smov %s803_s22  ;;  %18 = sbr.rel (!%p16_p5) target bundleno = 7 (0x7), region = 78 }
  0x89   :  { %288 = vsyncpa [#allocation3], 1 }
  0x8a   :  { %290 = vsyncpa [#allocation3 + $0x1], 1 }
  0x8b   :  { %291 = vsyncpa [#allocation4], 1 }
  0x8c   :  { %293 = vsyncpa [#allocation4 + $0x1], 1 }
  0x8d   :  { %294 = vsyncpa [#allocation5], 1 }
  0x8e   :  { %296 = vsyncpa [#allocation5 + $0x1], 1 }

</bundles_post_ra>
